<compile_context>
chip_gen: v6e
topology: v6e:2x2x1
jax: 0.10.0
libtpu: 0.0.40
codegen_flags: <defaults>
</compile_context>

<pallas_src>
import jax
import jax.numpy as jnp
from jax.experimental import pallas as pl
from jax.experimental.pallas import tpu as pltpu


def _patch_proj_kernel(a_ref, w_ref, b_ref, o_ref):
    # a_ref: (tr, gK)  w_ref: (gK, gE)  b_ref: (1, gE)  o_ref: (tr, gE)
    acc = jnp.dot(a_ref[...], w_ref[...], preferred_element_type=jnp.float32)
    o_ref[...] = (acc + b_ref[...]).astype(o_ref.dtype)


def _pick_tile_rows(mr, max_tr=8192, min_blocks=4):
    """Row tile over the packed-patch (sublane) axis.

    Small problems: a single full-array block (per-step overhead dominates
    anyway).  Large problems: aim for >= min_blocks equal-ish blocks (so the
    'parallel' grid axis can split across v7x's two TensorCores with >= 2
    steps each for DMA/compute overlap), each a multiple of 128 rows, capped
    at max_tr (~16 MiB double-buffered VMEM at 8192 rows x 128 f32 lanes).
    """
    if mr <= 1024:
        return mr
    tr = -(-mr // min_blocks)           # ceil(mr / min_blocks)
    tr = -(-tr // 128) * 128            # round up to a multiple of 128 rows
    return max(128, min(max_tr, tr))


def _pallas_patch_proj(A, Wt, bias, *, out_dtype, group, max_tr=8192):
    """O[Mtot, E] = A[Mtot, K] @ Wt[K, E] + bias, written in final layout.

    Rows are packed in groups of `group` so the kernel's output block is
    (tr, group*E) = (tr, 128): unmasked lane-dense stores, no post transpose.
    """
    Mtot, K = A.shape
    E = Wt.shape[1]
    g = group
    Mr, gK, gE = Mtot // g, g * K, g * E

    A_r = A.reshape(Mr, gK)                               # free row-major reshape
    if g == 1:
        Wbig = Wt
    else:
        # Block-diagonal weight: O_r[m, q*E+e] = sum_k A_r[m, q*K+k] * Wt[k, e]
        Wbig = jnp.kron(jnp.eye(g, dtype=Wt.dtype), Wt)   # (gK, gE), tiny
    bias_big = jnp.tile(bias.astype(jnp.float32), g).reshape(1, gE)

    tr = _pick_tile_rows(Mr, max_tr=max_tr)
    grid = pl.cdiv(Mr, tr)                                # ragged tail handled by Pallas

    out = pl.pallas_call(
        _patch_proj_kernel,
        out_shape=jax.ShapeDtypeStruct((Mr, gE), out_dtype),
        grid_spec=pltpu.PrefetchScalarGridSpec(
            num_scalar_prefetch=0,
            grid=(grid,),
            in_specs=[
                pl.BlockSpec((tr, gK), lambda j: (j, 0)),   # packed patch rows
                pl.BlockSpec((gK, gE), lambda j: (0, 0)),   # weight: constant block
                pl.BlockSpec((1, gE), lambda j: (0, 0)),    # bias: constant block
            ],
            out_specs=pl.BlockSpec((tr, gE), lambda j: (j, 0)),  # 128-lane dense
        ),
        compiler_params=pltpu.CompilerParams(
            dimension_semantics=("parallel",),
            vmem_limit_bytes=32 * 1024 * 1024,   # headroom for 8192-row tiles on v5e
        ),
    )(A_r, Wbig, bias_big)

    return out.reshape(Mtot, E)                            # free (memory-identical)


def patch_embed_forward(x, conv_weight, conv_bias, patch_size, *,
                        compute_dtype=None, use_pallas=None):
    """x: (B, C, T, V, M) f32; conv_weight: (E, C, 1, p); conv_bias: (E,).

    compute_dtype: optional narrower dtype (e.g. jnp.bfloat16) for the GEMM
      operands; accumulation and output stay f32 (module dtype).
    use_pallas: None = auto (skip the kernel for tiny problems, per perf review).
    """
    B, C, T, V, M = x.shape
    p = patch_size
    Tp = T // p
    E = conv_weight.shape[0]
    Mtot = B * V * Tp
    K = C * p
    out_dtype = x.dtype

    # ---- glue: ONE fused slice+transpose producing A (Mtot, K) in the FINAL
    # output row order: A[(b*V+v)*Tp + t', c*p + k] = x[b, c, t'*p + k, v, 0].
    xs = x[..., 0].reshape(B, C, Tp, p, V)
    A = xs.transpose(0, 4, 2, 1, 3).reshape(Mtot, K)
    # Conv weight already has the right (c, k) minor order: (E, C, 1, p) -> (E, K).
    Wt = conv_weight.reshape(E, K).T                       # (K, E)

    if compute_dtype is not None:
        A = A.astype(compute_dtype)
        Wt = Wt.astype(compute_dtype)

    if use_pallas is None:
        use_pallas = Mtot >= 8192      # below this, pallas_call fixed cost dominates
    if not use_pallas:
        out = (jnp.dot(A, Wt, preferred_element_type=jnp.float32)
               + conv_bias).astype(out_dtype)
        return out.reshape(B, V * Tp, E)

    # Pack g = 128//E rows per output block so stores are unmasked 128-lane.
    g = 1
    if E < 128 and 128 % E == 0 and Mtot % (128 // E) == 0:
        g = 128 // E
    out = _pallas_patch_proj(A, Wt, conv_bias, out_dtype=out_dtype, group=g)
    return out.reshape(B, V * Tp, E)


if __name__ == "__main__":
    # Module config: skeleton_nums=V=8, frame_nums=T=16, patch_size=4,
    # embed_dim=32 -> num_patches = 8 * 4 = 32.
    B, C, T, V, M = 2, 3, 16, 8, 2
    patch_size, embed_dim = 4, 32
    Tp = T // patch_size

    key = jax.random.PRNGKey(0)
    kx, kw, kb = jax.random.split(key, 3)
    x = jax.random.normal(kx, (B, C, T, V, M), dtype=jnp.float32)
    conv_weight = (jax.random.normal(kw, (embed_dim, C, 1, patch_size),
                                     dtype=jnp.float32) * 0.02)
    conv_bias = jax.random.normal(kb, (embed_dim,), dtype=jnp.float32) * 0.02

    # Pure-JAX reference of the same math (conv as per-patch linear projection).
    xsr = x[..., 0].transpose(0, 3, 1, 2)                              # (B, V, C, T)
    xsr = xsr.reshape(B, V, C, Tp, patch_size).transpose(0, 1, 3, 2, 4)
    xsr = xsr.reshape(B, V * Tp, C * patch_size)
    ref = xsr @ conv_weight.reshape(embed_dim, C * patch_size).T + conv_bias

    # 1) exact f32 path through the Pallas kernel (forced, despite the tiny size).
    out = patch_embed_forward(x, conv_weight, conv_bias, patch_size,
                              use_pallas=True)
    out = jax.block_until_ready(out)
    assert out.shape == (B, V * Tp, embed_dim)
    assert jnp.allclose(out, ref, atol=1e-5, rtol=1e-5)

    # 2) bf16-operand variant (perf feedback): f32 accumulate, f32 output.
    out_bf16 = patch_embed_forward(x, conv_weight, conv_bias, patch_size,
                                   compute_dtype=jnp.bfloat16, use_pallas=True)
    out_bf16 = jax.block_until_ready(out_bf16)
    assert jnp.allclose(out_bf16, ref, atol=1e-2, rtol=1e-2)

    # 3) auto-dispatch path (tiny problem -> plain XLA dot, per perf review).
    out_auto = jax.block_until_ready(
        patch_embed_forward(x, conv_weight, conv_bias, patch_size))
    assert jnp.allclose(out_auto, ref, atol=1e-5, rtol=1e-5)

    print("KERNEL_OK")
</pallas_src>

<mosaic_0001>
module attributes {stable_mosaic.version = 11 : i64} {
  func.func @_patch_proj_kernel(%arg0: i32, %arg1: memref<16x48xf32, #tpu.memory_space<vmem>>, %arg2: memref<48x128xf32, #tpu.memory_space<vmem>>, %arg3: memref<1x128xf32, #tpu.memory_space<vmem>>, %arg4: memref<16x128xf32, #tpu.memory_space<vmem>>) attributes {dimension_semantics = [#tpu.dimension_semantics<parallel>], iteration_bounds = array<i64: 1>, scalar_prefetch = 0 : i64, scratch_operands = 0 : i64, tpu.core_type = #tpu.core_type<tc>, window_params = [{transform_indices = @transform_0, window_bounds = array<i64: 16, 48>}, {pipeline_mode = #tpu.pipeline_mode<synchronous>, transform_indices = @transform_1, window_bounds = array<i64: 48, 128>}, {pipeline_mode = #tpu.pipeline_mode<synchronous>, transform_indices = @transform_2, window_bounds = array<i64: 1, 128>}, {transform_indices = @transform_3, window_bounds = array<i64: 16, 128>}]} {
    %c0 = arith.constant 0 : index
    %c0_0 = arith.constant 0 : index
    %0 = vector.load %arg1[%c0, %c0_0] : memref<16x48xf32, #tpu.memory_space<vmem>>, vector<16x48xf32>
    %c0_1 = arith.constant 0 : index
    %c0_2 = arith.constant 0 : index
    %1 = vector.load %arg2[%c0_1, %c0_2] : memref<48x128xf32, #tpu.memory_space<vmem>>, vector<48x128xf32>
    %cst = arith.constant dense<0.000000e+00> : vector<16x128xf32>
    %2 = tpu.matmul %0, %1, %cst {dimension_numbers = #tpu.dot_dimension_numbers<[1], [0], [0], [1], [0, 0, 1, 1], [], []>} : vector<16x48xf32>, vector<48x128xf32>, vector<16x128xf32> -> vector<16x128xf32>
    %c0_3 = arith.constant 0 : index
    %c0_4 = arith.constant 0 : index
    %3 = vector.load %arg3[%c0_3, %c0_4] : memref<1x128xf32, #tpu.memory_space<vmem>>, vector<1x128xf32>
    %4 = vector.broadcast %3 : vector<1x128xf32> to vector<16x128xf32>
    %5 = arith.addf %2, %4 : vector<16x128xf32>
    %c0_5 = arith.constant 0 : index
    %c0_6 = arith.constant 0 : index
    %6 = vector.load %arg4[%c0_5, %c0_6] : memref<16x128xf32, #tpu.memory_space<vmem>>, vector<16x128xf32>
    tpu.vector_store %arg4[%c0_5, %c0_6], %5 {strides = array<i32>} : memref<16x128xf32, #tpu.memory_space<vmem>>, vector<16x128xf32>,
    return
  }
  func.func @transform_0(%arg0: i32) -> (i32, i32) {
    %c0_i32 = arith.constant 0 : i32
    %c0_i32_0 = arith.constant 0 : i32
    return %arg0, %c0_i32 : i32, i32
  }
  func.func @transform_1(%arg0: i32) -> (i32, i32) {
    %c0_i32 = arith.constant 0 : i32
    %c0_i32_0 = arith.constant 0 : i32
    %c0_i32_1 = arith.constant 0 : i32
    return %c0_i32, %c0_i32_0 : i32, i32
  }
  func.func @transform_2(%arg0: i32) -> (i32, i32) {
    %c0_i32 = arith.constant 0 : i32
    %c0_i32_0 = arith.constant 0 : i32
    %c0_i32_1 = arith.constant 0 : i32
    return %c0_i32, %c0_i32_0 : i32, i32
  }
  func.func @transform_3(%arg0: i32) -> (i32, i32) {
    %c0_i32 = arith.constant 0 : i32
    %c0_i32_0 = arith.constant 0 : i32
    return %arg0, %c0_i32 : i32, i32
  }
}

</mosaic_0001>

<bundles_post_ra>
// kernel: tpu_custom_call.1
= control target key start
LH: loop header
LB: loop body
LE: loop exit
PB: predicated region body
PF: predicated region fallthrough
CT: control target
= control target key end

     0   :  { %8 = vsyncpa [#allocation3], 0  ;;  %s305_s0 = inlined_call_operand.hbm [shape: f32[16,48], index: 0, kind: input, shape index: {}]   ;;  %s306_s1 = inlined_call_operand.hbm [shape: f32[48,128], index: 1, kind: input, shape index: {}]   ;;  %s307_s2 = inlined_call_operand.vmem [shape: f32[1,128], index: 2, kind: input, shape index: {}]   ;;  %s308_s3 = inlined_call_operand.hbm [shape: f32[16,128], index: 3, kind: output, shape index: {}]  }
   0x1   :  { %9 = vsyncpa [#allocation6], 0 }
   0x2   :  { %10 = vsyncpa [#allocation4], 0  ;;  %s257_s12 = smov [#allocation2]  }
   0x3   :  { %s16_s13 = sshll.u32 %s257_s12, 4  ;;  %s17_s13 = int_to_ptr.vmem [resolvable:$true] %s16_s13 }
   0x4   :  { %s199_s14 = scalar_lea.vmem %s17_s13, 256  ;;  %p204_p1 = scmp.lt.s32.totalorder %s17_s13, %s17_s13 }
   0x5   :  { %p200_p0 = scmp.ne.s32.totalorder %s17_s13, %s199_s14  ;;  %p205_p2 = scmp.lt.s32.totalorder %s199_s14, %s199_s14 }
   0x7   :  { %p206_p3 = por %p205_p2, %p204_p1 }
   0x9   :  { %p207_p4 = pnand %p206_p3, %p200_p0 }
   0xb   :  { %210 = shalt.err (!%p207_p4)
}
   0xc   :  { %s258_s15 = smov 128   ;;  %s259_s16 = smov 8  }
   0xd   :  { %22 = dma.hbm_to_vmem [thread:$0]  %s305_s0, 256, %s17_s13, [#allocation3], %s258_s15, %s258_s15, %s259_s16  }
   0xe   :  { %s260_s19 = smov [#allocation5]  }
   0xf   :  { %s28_s20 = sshll.u32 %s260_s19, 4  ;;  %s29_s20 = int_to_ptr.vmem [resolvable:$true] %s28_s20 }
  0x10   :  { %s219_s21 = scalar_lea.vmem %s29_s20, 768  ;;  %p224_p6 = scmp.lt.s32.totalorder %s29_s20, %s29_s20 }
  0x11   :  { %p220_p5 = scmp.ne.s32.totalorder %s29_s20, %s219_s21  ;;  %p225_p7 = scmp.lt.s32.totalorder %s219_s21, %s219_s21 }
  0x13   :  { %p226_p8 = por %p225_p7, %p224_p6 }
  0x15   :  { %p227_p9 = pnand %p226_p8, %p220_p5 }
  0x17   :  { %230 = shalt.err (!%p227_p9)
}
  0x18   :  { %34 = dma.hbm_to_vmem [thread:$0]  %s306_s1, 768, %s29_s20, [#allocation6], %s258_s15, %s258_s15, %s259_s16  }
  0x19   :  { %251 = dma.done.wait [#allocation3], 256  }
  0x1a   :  { %252 = vsyncadd [#allocation3], 4294967040 }
  0x1b   :  { %253 = dma.done.wait [#allocation6], 768  }
  0x1c   :  { %254 = vsyncadd [#allocation6], 4294966528  ;;  %v50_v0 = vld [vmem:[#allocation5 + $0x28] sm:$0xff]  ;;  %v49_v1 = vld [vmem:[#allocation5 + $0x20] sm:$0xff]  ;;  %vm58_vm0 = vcmask 392192   ;;  %s261_s24 = smov [#allocation7]  }
  0x1d   :  { %171 = vmatprep.subr.mxu0 %v50_v0  ;;  %v48_v2 = vld [vmem:[#allocation5 + $0x18] sm:$0xff]  ;;  %v43_v3 = vld [vmem:[#allocation2] sm:$0xff]  ;;  %v46_v5 = vld [vmem:[#allocation5 + $0x8] sm:$0xff]  ;;  %s147_s25 = sshll.u32 %s261_s24, 4  ;;  %s148_s25 = int_to_ptr.vmem [resolvable:$true] %s147_s25 }
  0x1e   :  { %172 = vmatpush3.msra.mxu0 %v50_v0  ;;  %183 = vmatprep.mubr.msk.f32.mxu0 %vm58_vm0, %v43_v3  ;;  %v47_v4 = vld [vmem:[#allocation5 + $0x10] sm:$0xff]  ;;  %v45_v6 = vld [vmem:[#allocation5] sm:$0xff]  ;;  %v44_v7 = vld [vmem:[#allocation2 + $0x8] sm:$0xff]  ;;  %s231_s26 = scalar_lea.vmem %s148_s25, 256  ;;  %p236_p11 = scmp.lt.s32.totalorder %s148_s25, %s148_s25 }
  0x1f   :  { %173 = vmatprep.subr.mxu0 %v49_v1  ;;  %v160_v8 = vld [vmem:[%s307_s2] ss:$0 sm:$0xff]  ;;  %p232_p10 = scmp.ne.s32.totalorder %s148_s25, %s231_s26  ;;  %p237_p12 = scmp.lt.s32.totalorder %s231_s26, %s231_s26 }
  0x20   :  { %174 = vmatpush3.msra.mxu0 %v49_v1 }
  0x21   :  { %175 = vmatprep.subr.mxu0 %v48_v2  ;;  %p238_p13 = por %p237_p12, %p236_p11 }
  0x22   :  { %176 = vmatpush3.msra.mxu0 %v48_v2 }
  0x23   :  { %177 = vmatprep.subr.mxu0 %v47_v4  ;;  %p239_p0 = pnand %p238_p13, %p232_p10 }
  0x24   :  { %178 = vmatpush3.msra.mxu0 %v47_v4 }
  0x25   :  { %179 = vmatprep.subr.mxu0 %v46_v5 }
  0x26   :  { %180 = vmatpush3.msra.mxu0 %v46_v5 }
  0x27   :  { %181 = vmatprep.subr.mxu0 %v45_v6 }
  0x28   :  { %182 = vmatpush3.msra.mxu0 %v45_v6 }
  0x29   :  { %184 = vmatmul.mubr.msk.f32.vlgmr.msra.gmra.mxu0 %vm58_vm0, %v44_v7 }
  0xe9   :  { %v185_v9 = vpop.f32.mrf.mxu0 }
  0xea   :  { %v137_v10 = vadd.f32 %v185_v9, %v160_v8 }
  0xeb   :  { %v131_v11 = vpop.f32.mrf.mxu0 }
  0xec   :  { %141 = vst [vmem:[#allocation7 + $0x8] sm:$0xff] %v137_v10  ;;  %v132_v12 = vadd.f32 %v160_v8, %v131_v11 }
  0xee   :  { %140 = vst [vmem:[#allocation7] sm:$0xff] %v132_v12 }
  0xef   :  { %242 = shalt.err (!%p239_p0)
}
  0xf0   :  { %153 = dma.vmem_to_hbm [thread:$0]  %s148_s25, 256, %s308_s3, [#allocation4], %s258_s15, %s258_s15, %s259_s16  }
  0xf1   :  { %255 = dma.done.wait [#allocation4], 256  }
  0xf2   :  { %256 = vsyncadd [#allocation4], 4294967040 }
  0xf3   :  { %157 = vsyncpa [#allocation3], 1 }
  0xf4   :  { %158 = vsyncpa [#allocation6], 1 }
  0xf5   :  { %159 = vsyncpa [#allocation4], 1 }

</bundles_post_ra>
